<compile_context>
chip_gen: v7x
topology: tpu7x:2x2x1
jax: 0.10.0
libtpu: 0.0.40
codegen_flags: <defaults>
</compile_context>

<pallas_src>
import functools

import jax
import jax.numpy as jnp
import numpy as np
from jax.experimental import pallas as pl
from jax.experimental.pallas import tpu as pltpu

EPS_ASP = 1e-12   # AttentiveStatisticsPooling variance clamp
EPS_BN = 1e-5     # nn.BatchNorm1d default eps
_NEG_BIG = -1e30  # finite "minus infinity" for the online-softmax running max


def attstats_kernel(x_ref, w1x_ref, w1gs_ref, pk1_ref, w2_ref, wfc_ref, bfc_ref,
                    out_ref,
                    sumx_ref, sumsq_ref, biasg_ref, m_ref, l_ref, s1_ref, s2_ref,
                    *, total_t):
    p = pl.program_id(1)            # phase: 0 = global-stats pass, 1 = attention pass
    t = pl.program_id(2)            # time tile index
    nt = pl.num_programs(2)

    xb = x_ref[...]                 # (Bb, Tt, C) in x dtype (f32 or bf16)
    Bb, Tt, C = xb.shape
    xf = xb.astype(jnp.float32)     # f32 for all reductions / variances
    mm_dtype = w1x_ref.dtype        # f32, or bf16 when use_bf16_matmul
    inv_T = 1.0 / total_t

    # ---------------- pass 1: streaming global sum / sum-of-squares ----------------
    @pl.when(p == 0)
    def _global_pass():
        @pl.when(t == 0)
        def _():
            sumx_ref[...] = jnp.zeros_like(sumx_ref)
            sumsq_ref[...] = jnp.zeros_like(sumsq_ref)
        sumx_ref[...] += jnp.sum(xf, axis=1)
        sumsq_ref[...] += jnp.sum(xf * xf, axis=1)

    # ------- pass 2: TDNN + attention conv1x1, online time-softmax, weighted stats -------
    @pl.when(p == 1)
    def _attn_pass():
        mean_g = sumx_ref[...] * inv_T                                 # (Bb, C)

        @pl.when(t == 0)
        def _init():
            var_g = jnp.maximum(sumsq_ref[...] * inv_T - mean_g * mean_g, EPS_ASP)
            std_g = jnp.sqrt(var_g)
            gstats = jnp.concatenate([mean_g, std_g], axis=-1)         # (Bb, 2C)
            # rank-1 global-stats part of the TDNN conv1x1, with the conv bias folded in
            biasg_ref[...] = (jnp.dot(gstats.astype(mm_dtype), w1gs_ref[...],
                                      preferred_element_type=jnp.float32)
                              + pk1_ref[...][0:1, :])
            m_ref[...] = jnp.full(m_ref.shape, _NEG_BIG, jnp.float32)
            l_ref[...] = jnp.zeros_like(l_ref)
            s1_ref[...] = jnp.zeros_like(s1_ref)
            s2_ref[...] = jnp.zeros_like(s2_ref)

        pk1 = pk1_ref[...]                                             # (3, A)

        # TDNNBlock conv1x1: x-part on the MXU (M = Bb*Tt) + broadcast rank-1 term
        hx = jnp.dot(xb.reshape(Bb * Tt, C).astype(mm_dtype), w1x_ref[...],
                     preferred_element_type=jnp.float32)
        h = hx.reshape(Bb, Tt, -1) + biasg_ref[...][:, None, :]
        h = jnp.maximum(h, 0.0)                                        # ReLU
        h = h * pk1[1:2, :] + pk1[2:3, :]                              # BN1d (eval), folded
        h = jnp.tanh(h)
        A = h.shape[-1]

        # attention conv1x1 -> logits; its bias is constant over time and cancels
        # exactly in the time softmax, so it is dropped.
        logits = jnp.dot(h.reshape(Bb * Tt, A).astype(mm_dtype), w2_ref[...],
                         preferred_element_type=jnp.float32).reshape(Bb, Tt, C)

        # online softmax accumulation; x centered around the global mean for stability
        m_old = m_ref[...]
        m_new = jnp.maximum(m_old, jnp.max(logits, axis=1))            # (Bb, C)
        alpha = jnp.exp(m_old - m_new)
        e = jnp.exp(logits - m_new[:, None, :])                        # (Bb, Tt, C)
        xc = xf - mean_g[:, None, :]
        exc = e * xc                                                   # reused twice
        m_ref[...] = m_new
        l_ref[...] = alpha * l_ref[...] + jnp.sum(e, axis=1)
        s1_ref[...] = alpha * s1_ref[...] + jnp.sum(exc, axis=1)
        s2_ref[...] = alpha * s2_ref[...] + jnp.sum(exc * xc, axis=1)

        @pl.when(t == nt - 1)
        def _finalize():
            inv_l = pl.reciprocal(l_ref[...], approx=False)            # (Bb, C)
            mu_c = s1_ref[...] * inv_l                                 # attn mean of (x - mean_g)
            mean_a = mean_g + mu_c
            var_a = jnp.maximum(s2_ref[...] * inv_l - mu_c * mu_c, EPS_ASP)
            std_a = jnp.sqrt(var_a)
            stats = jnp.concatenate([mean_a, std_a], axis=-1)          # (Bb, 2C)
            # fc conv1x1 with asp_bn folded in (kept f32; M = Bb is tiny)
            out = jnp.dot(stats.astype(wfc_ref.dtype), wfc_ref[...],
                          preferred_element_type=jnp.float32) + bfc_ref[...]
            out_ref[...] = out.reshape(Bb, 1, -1).astype(out_ref.dtype)


def _vmem_footprint(Bb, Tt, C, A, N, x_bytes, w_bytes):
    """Rough per-grid-step VMEM footprint (bytes) for tile selection."""
    x_blk = 2 * Bb * Tt * C * x_bytes                          # double-buffered x tile
    weights = 2 * ((3 * C * A + A * C) * w_bytes + (3 * A + 2 * C * N + N) * 4)
    acts = Bb * Tt * (A + 4 * C) * 4                           # h, logits/e, xc, exc
    scratch = (6 * Bb * C + Bb * A) * 4
    out = 2 * Bb * N * 4
    return x_blk + weights + acts + scratch + out


def _select_tiling(B, T, C, A, N, x_bytes, w_bytes, vmem_limit,
                   batch_block=None, time_block=None):
    budget = int(0.6 * vmem_limit)

    if time_block is not None:
        tt_cands = [time_block]
    elif T % 8 == 0:
        divs = [d for d in range(8, T + 1, 8) if T % d == 0]
        under = [d for d in divs if d <= 256]
        first = max(under) if under else min(divs)
        tt_cands = [first] + sorted([d for d in divs if d < first], reverse=True)
    else:
        # TODO(synk): pad + mask time instead of the monolithic fallback tile.
        tt_cands = [T]

    # Cap Bb at B//2 so the "parallel" batch axis has >=2 steps (v7x megacore).
    bb_cap = batch_block if batch_block is not None else min(8, max(1, B // 2))
    bb_cap = max(1, min(bb_cap, B))

    best = (1, tt_cands[-1])
    for Tt in tt_cands:
        Bb = bb_cap
        while B % Bb:
            Bb -= 1
        while Bb > 1 and _vmem_footprint(Bb, Tt, C, A, N, x_bytes, w_bytes) > budget:
            Bb -= 1
            while B % Bb:
                Bb -= 1
        best = (Bb, Tt)
        if _vmem_footprint(Bb, Tt, C, A, N, x_bytes, w_bytes) <= budget:
            break
    return best


def attstats_forward(x, params, *, batch_block=None, time_block=None,
                     use_bf16_matmul=False):
    """x: (batch, time, channel) f32.  Returns (batch, 1, lin_neurons) f32.

    use_bf16_matmul: cast x and the conv weights to bf16 (f32 accumulation and f32
    statistics inside the kernel).  Recommended for production on v5e/v6e/v7x
    (halves HBM traffic and uses the native bf16 MXU); default off only so the
    1e-4 correctness check against the f32 reference holds.
    """
    B, T, C = x.shape
    A = params["w1"].shape[1]
    N = params["wfc"].shape[1]

    # generation-aware VMEM limit: ~52 MiB on v7x (64 MiB physical), up to 100 MiB
    # on v5e/v6e (128 MiB physical).
    try:
        vmem_cap = pltpu.get_tpu_info().vmem_capacity_bytes
    except Exception:
        vmem_cap = 64 * 1024 * 1024
    if not vmem_cap:
        vmem_cap = 64 * 1024 * 1024
    vmem_limit = min(100 * 1024 * 1024, int(vmem_cap * 0.8))

    x_bytes = 2 if use_bf16_matmul else 4
    w_bytes = 2 if use_bf16_matmul else 4
    if time_block is not None:
        assert T % time_block == 0, "time_block must divide T"
    Bb, Tt = _select_tiling(B, T, C, A, N, x_bytes, w_bytes, vmem_limit,
                            batch_block=batch_block, time_block=time_block)

    # ---- host-side folding / packing (cheap, outside the kernel) ----
    w1x = params["w1"][:C]                       # (C, A)   x part of the TDNN conv
    w1gs = params["w1"][C:]                      # (2C, A)  [mean, std] part
    pk1 = jnp.concatenate(
        [params["b1"], params["bn1_scale"], params["bn1_shift"]], axis=0)   # (3, A)
    w2 = params["w2"]                            # (A, C); its bias cancels in softmax
    wfc = params["wfc"] * params["bn2_scale"].reshape(2 * C, 1)   # fold asp_bn scale
    bfc = params["bfc"] + params["bn2_shift"] @ params["wfc"]     # fold asp_bn shift

    if use_bf16_matmul:
        x = x.astype(jnp.bfloat16)
        w1x, w1gs, w2 = (a.astype(jnp.bfloat16) for a in (w1x, w1gs, w2))

    def const_spec(arr):
        zeros = (0,) * arr.ndim
        return pl.BlockSpec(arr.shape, lambda b, p, t, _z=zeros: _z)

    in_specs = [
        pl.BlockSpec((Bb, Tt, C), lambda b, p, t: (b, t, 0)),    # x tile (re-read per phase)
        const_spec(w1x), const_spec(w1gs), const_spec(pk1),
        const_spec(w2), const_spec(wfc), const_spec(bfc),
    ]
    out_spec = pl.BlockSpec((Bb, 1, N), lambda b, p, t: (b, 0, 0))

    kernel = functools.partial(attstats_kernel, total_t=T)

    return pl.pallas_call(
        kernel,
        out_shape=jax.ShapeDtypeStruct((B, 1, N), jnp.float32),
        grid_spec=pltpu.PrefetchScalarGridSpec(
            num_scalar_prefetch=0,
            grid=(B // Bb, 2, T // Tt),                 # (batch block, phase, time tile)
            in_specs=in_specs,
            out_specs=out_spec,
            scratch_shapes=[
                pltpu.VMEM((Bb, C), jnp.float32),   # sum(x) over time
                pltpu.VMEM((Bb, C), jnp.float32),   # sum(x^2) over time
                pltpu.VMEM((Bb, A), jnp.float32),   # bias_g = gstats @ W1[C:] + b1
                pltpu.VMEM((Bb, C), jnp.float32),   # m  (online-softmax running max)
                pltpu.VMEM((Bb, C), jnp.float32),   # l  (running denominator)
                pltpu.VMEM((Bb, C), jnp.float32),   # s1 (sum e*(x - mean_g))
                pltpu.VMEM((Bb, C), jnp.float32),   # s2 (sum e*(x - mean_g)^2)
            ],
        ),
        compiler_params=pltpu.CompilerParams(
            dimension_semantics=("parallel", "arbitrary", "arbitrary"),
            vmem_limit_bytes=vmem_limit,
        ),
    )(x, w1x, w1gs, pk1, w2, wfc, bfc)


def init_params(key, C, A, N):
    """Deterministic synthetic init matching the PyTorch parameter shapes.

    torch shapes: tdnn.conv.weight (A, 3C, 1), asp.conv.weight (C, A, 1),
                  fc.weight (N, 2C, 1);  stored here transposed for x @ W.
    BN: weight/bias random, running_mean=0, running_var=1 (eval mode).
    """
    ks = jax.random.split(key, 10)
    w1 = jax.random.normal(ks[0], (3 * C, A), jnp.float32) / np.sqrt(3 * C)
    b1 = 0.05 * jax.random.normal(ks[1], (1, A), jnp.float32)
    w2 = jax.random.normal(ks[2], (A, C), jnp.float32) / np.sqrt(A)
    b2 = 0.05 * jax.random.normal(ks[3], (1, C), jnp.float32)
    wfc = jax.random.normal(ks[4], (2 * C, N), jnp.float32) / np.sqrt(2 * C)
    bfc = 0.05 * jax.random.normal(ks[5], (1, N), jnp.float32)

    g1 = 1.0 + 0.1 * jax.random.normal(ks[6], (1, A), jnp.float32)
    beta1 = 0.1 * jax.random.normal(ks[7], (1, A), jnp.float32)
    g2 = 1.0 + 0.1 * jax.random.normal(ks[8], (1, 2 * C), jnp.float32)
    beta2 = 0.1 * jax.random.normal(ks[9], (1, 2 * C), jnp.float32)
    rm1 = jnp.zeros((1, A), jnp.float32); rv1 = jnp.ones((1, A), jnp.float32)
    rm2 = jnp.zeros((1, 2 * C), jnp.float32); rv2 = jnp.ones((1, 2 * C), jnp.float32)

    bn1_scale = g1 / jnp.sqrt(rv1 + EPS_BN)
    bn1_shift = beta1 - rm1 * bn1_scale
    bn2_scale = g2 / jnp.sqrt(rv2 + EPS_BN)
    bn2_shift = beta2 - rm2 * bn2_scale

    return dict(w1=w1, b1=b1, bn1_scale=bn1_scale, bn1_shift=bn1_shift,
                w2=w2, b2=b2, bn2_scale=bn2_scale, bn2_shift=bn2_shift,
                wfc=wfc, bfc=bfc)


def reference_forward(x, p):
    """Pure-JAX reference mirroring the PyTorch AttStats forward (lengths=None)."""
    mean_g = jnp.mean(x, axis=1, keepdims=True)
    std_g = jnp.sqrt(jnp.maximum(jnp.mean((x - mean_g) ** 2, axis=1, keepdims=True), EPS_ASP))
    attn_in = jnp.concatenate(
        [x, jnp.broadcast_to(mean_g, x.shape), jnp.broadcast_to(std_g, x.shape)], axis=-1)
    h = jnp.einsum("btk,ka->bta", attn_in, p["w1"]) + p["b1"]
    h = jnp.maximum(h, 0.0) * p["bn1_scale"] + p["bn1_shift"]
    h = jnp.tanh(h)
    logits = jnp.einsum("bta,ac->btc", h, p["w2"]) + p["b2"]
    attn = jax.nn.softmax(logits, axis=1)
    mean_a = jnp.sum(attn * x, axis=1, keepdims=True)
    std_a = jnp.sqrt(jnp.maximum(jnp.sum(attn * (x - mean_a) ** 2, axis=1, keepdims=True), EPS_ASP))
    stats = jnp.concatenate([mean_a, std_a], axis=-1)              # (B, 1, 2C)
    stats = stats * p["bn2_scale"] + p["bn2_shift"]
    return jnp.einsum("btk,kn->btn", stats, p["wfc"]) + p["bfc"]   # (B, 1, N)


if __name__ == "__main__":
    # module config (scaled down): input_size=32, lin_neurons=48, attention_channels=64
    B, T, C = 2, 16, 32
    A, N = 64, 48

    key = jax.random.PRNGKey(0)
    kx, kp = jax.random.split(key)
    x = jax.random.normal(kx, (B, T, C), jnp.float32)   # (batch, time, channel) as in torch
    params = init_params(kp, C, A, N)

    ref = reference_forward(x, params)

    # f32 path; time_block=8 forces 2 time tiles so the online-softmax path is exercised
    out = jax.block_until_ready(attstats_forward(x, params, time_block=8))
    assert out.shape == (B, 1, N), out.shape
    np.testing.assert_allclose(np.asarray(out), np.asarray(ref), rtol=1e-4, atol=1e-4)

    # bf16-operand production path (f32 accumulation): loose sanity check only
    out_bf16 = jax.block_until_ready(
        attstats_forward(x, params, time_block=8, use_bf16_matmul=True))
    np.testing.assert_allclose(np.asarray(out_bf16), np.asarray(ref), rtol=0.2, atol=0.2)

    print("KERNEL_OK")
</pallas_src>

<mosaic_0001>
module attributes {stable_mosaic.version = 11 : i64} {
  func.func @attstats_kernel(%arg0: i32, %arg1: i32, %arg2: i32, %arg3: memref<1x8x32xf32, #tpu.memory_space<vmem>>, %arg4: memref<32x64xf32, #tpu.memory_space<vmem>>, %arg5: memref<64x64xf32, #tpu.memory_space<vmem>>, %arg6: memref<3x64xf32, #tpu.memory_space<vmem>>, %arg7: memref<64x32xf32, #tpu.memory_space<vmem>>, %arg8: memref<64x48xf32, #tpu.memory_space<vmem>>, %arg9: memref<1x48xf32, #tpu.memory_space<vmem>>, %arg10: memref<1x1x48xf32, #tpu.memory_space<vmem>>, %arg11: memref<1x32xf32, #tpu.memory_space<vmem>>, %arg12: memref<1x32xf32, #tpu.memory_space<vmem>>, %arg13: memref<1x64xf32, #tpu.memory_space<vmem>>, %arg14: memref<1x32xf32, #tpu.memory_space<vmem>>, %arg15: memref<1x32xf32, #tpu.memory_space<vmem>>, %arg16: memref<1x32xf32, #tpu.memory_space<vmem>>, %arg17: memref<1x32xf32, #tpu.memory_space<vmem>>) attributes {dimension_semantics = [#tpu.dimension_semantics<parallel>, #tpu.dimension_semantics<arbitrary>, #tpu.dimension_semantics<arbitrary>], iteration_bounds = array<i64: 2, 2, 2>, scalar_prefetch = 0 : i64, scratch_operands = 7 : i64, tpu.core_type = #tpu.core_type<tc>, window_params = [{transform_indices = @transform_0, window_bounds = array<i64: 1, 8, 32>}, {pipeline_mode = #tpu.pipeline_mode<synchronous>, transform_indices = @transform_1, window_bounds = array<i64: 32, 64>}, {pipeline_mode = #tpu.pipeline_mode<synchronous>, transform_indices = @transform_2, window_bounds = array<i64: 64, 64>}, {pipeline_mode = #tpu.pipeline_mode<synchronous>, transform_indices = @transform_3, window_bounds = array<i64: 3, 64>}, {pipeline_mode = #tpu.pipeline_mode<synchronous>, transform_indices = @transform_4, window_bounds = array<i64: 64, 32>}, {pipeline_mode = #tpu.pipeline_mode<synchronous>, transform_indices = @transform_5, window_bounds = array<i64: 64, 48>}, {pipeline_mode = #tpu.pipeline_mode<synchronous>, transform_indices = @transform_6, window_bounds = array<i64: 1, 48>}, {transform_indices = @transform_7, window_bounds = array<i64: 1, 1, 48>}]} {
    %c0 = arith.constant 0 : index
    %c0_0 = arith.constant 0 : index
    %c0_1 = arith.constant 0 : index
    %0 = vector.load %arg3[%c0, %c0_0, %c0_1] : memref<1x8x32xf32, #tpu.memory_space<vmem>>, vector<1x8x32xf32>
    %c0_i32 = arith.constant 0 : i32
    %1 = arith.cmpi eq, %arg1, %c0_i32 : i32
    %2 = arith.extui %1 : i1 to i32
    %c0_i32_2 = arith.constant 0 : i32
    %3 = arith.cmpi ne, %2, %c0_i32_2 : i32
    scf.if %3 {
      %c0_i32_4 = arith.constant 0 : i32
      %7 = arith.cmpi eq, %arg2, %c0_i32_4 : i32
      %8 = arith.extui %7 : i1 to i32
      %c0_i32_5 = arith.constant 0 : i32
      %9 = arith.cmpi ne, %8, %c0_i32_5 : i32
      scf.if %9 {
        %cst_15 = arith.constant 0.000000e+00 : f32
        %19 = vector.broadcast %cst_15 : f32 to vector<1x32xf32>
        %c0_16 = arith.constant 0 : index
        %c0_17 = arith.constant 0 : index
        %20 = vector.load %arg11[%c0_16, %c0_17] : memref<1x32xf32, #tpu.memory_space<vmem>>, vector<1x32xf32>
        tpu.vector_store %arg11[%c0_16, %c0_17], %19 {strides = array<i32>} : memref<1x32xf32, #tpu.memory_space<vmem>>, vector<1x32xf32>,
        %cst_18 = arith.constant 0.000000e+00 : f32
        %21 = vector.broadcast %cst_18 : f32 to vector<1x32xf32>
        %c0_19 = arith.constant 0 : index
        %c0_20 = arith.constant 0 : index
        %22 = vector.load %arg12[%c0_19, %c0_20] : memref<1x32xf32, #tpu.memory_space<vmem>>, vector<1x32xf32>
        tpu.vector_store %arg12[%c0_19, %c0_20], %21 {strides = array<i32>} : memref<1x32xf32, #tpu.memory_space<vmem>>, vector<1x32xf32>,
      } else {
      }
      %c0_6 = arith.constant 0 : index
      %c0_7 = arith.constant 0 : index
      %10 = vector.load %arg11[%c0_6, %c0_7] : memref<1x32xf32, #tpu.memory_space<vmem>>, vector<1x32xf32>
      %cst = arith.constant dense<0.000000e+00> : vector<1x32xf32>
      %11 = vector.multi_reduction <add>, %0, %cst [1] : vector<1x8x32xf32> to vector<1x32xf32>
      %12 = arith.addf %10, %11 : vector<1x32xf32>
      %c0_8 = arith.constant 0 : index
      %c0_9 = arith.constant 0 : index
      %13 = vector.load %arg11[%c0_8, %c0_9] : memref<1x32xf32, #tpu.memory_space<vmem>>, vector<1x32xf32>
      tpu.vector_store %arg11[%c0_8, %c0_9], %12 {strides = array<i32>} : memref<1x32xf32, #tpu.memory_space<vmem>>, vector<1x32xf32>,
      %c0_10 = arith.constant 0 : index
      %c0_11 = arith.constant 0 : index
      %14 = vector.load %arg12[%c0_10, %c0_11] : memref<1x32xf32, #tpu.memory_space<vmem>>, vector<1x32xf32>
      %15 = arith.mulf %0, %0 : vector<1x8x32xf32>
      %cst_12 = arith.constant dense<0.000000e+00> : vector<1x32xf32>
      %16 = vector.multi_reduction <add>, %15, %cst_12 [1] : vector<1x8x32xf32> to vector<1x32xf32>
      %17 = arith.addf %14, %16 : vector<1x32xf32>
      %c0_13 = arith.constant 0 : index
      %c0_14 = arith.constant 0 : index
      %18 = vector.load %arg12[%c0_13, %c0_14] : memref<1x32xf32, #tpu.memory_space<vmem>>, vector<1x32xf32>
      tpu.vector_store %arg12[%c0_13, %c0_14], %17 {strides = array<i32>} : memref<1x32xf32, #tpu.memory_space<vmem>>, vector<1x32xf32>,
    } else {
    }
    %c1_i32 = arith.constant 1 : i32
    %4 = arith.cmpi eq, %arg1, %c1_i32 : i32
    %5 = arith.extui %4 : i1 to i32
    %c0_i32_3 = arith.constant 0 : i32
    %6 = arith.cmpi ne, %5, %c0_i32_3 : i32
    scf.if %6 {
      %c0_4 = arith.constant 0 : index
      %c0_5 = arith.constant 0 : index
      %7 = vector.load %arg11[%c0_4, %c0_5] : memref<1x32xf32, #tpu.memory_space<vmem>>, vector<1x32xf32>
      %cst = arith.constant 6.250000e-02 : f32
      %8 = vector.broadcast %cst : f32 to vector<1x32xf32>
      %9 = arith.mulf %7, %8 : vector<1x32xf32>
      %c0_i32_6 = arith.constant 0 : i32
      %10 = arith.cmpi eq, %arg2, %c0_i32_6 : i32
      %11 = arith.extui %10 : i1 to i32
      %c0_i32_7 = arith.constant 0 : i32
      %12 = arith.cmpi ne, %11, %c0_i32_7 : i32
      scf.if %12 {
        %c0_41 = arith.constant 0 : index
        %c0_42 = arith.constant 0 : index
        %70 = vector.load %arg12[%c0_41, %c0_42] : memref<1x32xf32, #tpu.memory_space<vmem>>, vector<1x32xf32>
        %cst_43 = arith.constant 6.250000e-02 : f32
        %71 = vector.broadcast %cst_43 : f32 to vector<1x32xf32>
        %72 = arith.mulf %70, %71 : vector<1x32xf32>
        %73 = arith.mulf %9, %9 : vector<1x32xf32>
        %74 = arith.subf %72, %73 : vector<1x32xf32>
        %cst_44 = arith.constant 9.99999996E-13 : f32
        %75 = vector.broadcast %cst_44 : f32 to vector<1x32xf32>
        %76 = arith.maximumf %74, %75 : vector<1x32xf32>
        %77 = math.sqrt %76 : vector<1x32xf32>
        %78 = tpu.concatenate %9, %77 in 1 : vector<1x32xf32>, vector<1x32xf32> -> vector<1x64xf32>
        %c0_45 = arith.constant 0 : index
        %c0_46 = arith.constant 0 : index
        %79 = vector.load %arg5[%c0_45, %c0_46] : memref<64x64xf32, #tpu.memory_space<vmem>>, vector<64x64xf32>
        %cst_47 = arith.constant dense<0.000000e+00> : vector<1x64xf32>
        %80 = tpu.matmul %78, %79, %cst_47 {dimension_numbers = #tpu.dot_dimension_numbers<[1], [0], [0], [1], [0, 0, 1, 1], [], []>} : vector<1x64xf32>, vector<64x64xf32>, vector<1x64xf32> -> vector<1x64xf32>
        %c0_48 = arith.constant 0 : index
        %c0_49 = arith.constant 0 : index
        %81 = vector.load %arg6[%c0_48, %c0_49] : memref<3x64xf32, #tpu.memory_space<vmem>>, vector<3x64xf32>
        %82 = vector.extract_strided_slice %81 {offsets = [0, 0], sizes = [1, 64], strides = [1, 1]} : vector<3x64xf32> to vector<1x64xf32>
        %83 = arith.addf %80, %82 : vector<1x64xf32>
        %c0_50 = arith.constant 0 : index
        %c0_51 = arith.constant 0 : index
        %84 = vector.load %arg13[%c0_50, %c0_51] : memref<1x64xf32, #tpu.memory_space<vmem>>, vector<1x64xf32>
        tpu.vector_store %arg13[%c0_50, %c0_51], %83 {strides = array<i32>} : memref<1x64xf32, #tpu.memory_space<vmem>>, vector<1x64xf32>,
        %cst_52 = arith.constant -1.000000e+30 : f32
        %85 = vector.broadcast %cst_52 : f32 to vector<1x32xf32>
        %c0_53 = arith.constant 0 : index
        %c0_54 = arith.constant 0 : index
        %86 = vector.load %arg14[%c0_53, %c0_54] : memref<1x32xf32, #tpu.memory_space<vmem>>, vector<1x32xf32>
        tpu.vector_store %arg14[%c0_53, %c0_54], %85 {strides = array<i32>} : memref<1x32xf32, #tpu.memory_space<vmem>>, vector<1x32xf32>,
        %cst_55 = arith.constant 0.000000e+00 : f32
        %87 = vector.broadcast %cst_55 : f32 to vector<1x32xf32>
        %c0_56 = arith.constant 0 : index
        %c0_57 = arith.constant 0 : index
        %88 = vector.load %arg15[%c0_56, %c0_57] : memref<1x32xf32, #tpu.memory_space<vmem>>, vector<1x32xf32>
        tpu.vector_store %arg15[%c0_56, %c0_57], %87 {strides = array<i32>} : memref<1x32xf32, #tpu.memory_space<vmem>>, vector<1x32xf32>,
        %cst_58 = arith.constant 0.000000e+00 : f32
        %89 = vector.broadcast %cst_58 : f32 to vector<1x32xf32>
        %c0_59 = arith.constant 0 : index
        %c0_60 = arith.constant 0 : index
        %90 = vector.load %arg16[%c0_59, %c0_60] : memref<1x32xf32, #tpu.memory_space<vmem>>, vector<1x32xf32>
        tpu.vector_store %arg16[%c0_59, %c0_60], %89 {strides = array<i32>} : memref<1x32xf32, #tpu.memory_space<vmem>>, vector<1x32xf32>,
        %cst_61 = arith.constant 0.000000e+00 : f32
        %91 = vector.broadcast %cst_61 : f32 to vector<1x32xf32>
        %c0_62 = arith.constant 0 : index
        %c0_63 = arith.constant 0 : index
        %92 = vector.load %arg17[%c0_62, %c0_63] : memref<1x32xf32, #tpu.memory_space<vmem>>, vector<1x32xf32>
        tpu.vector_store %arg17[%c0_62, %c0_63], %91 {strides = array<i32>} : memref<1x32xf32, #tpu.memory_space<vmem>>, vector<1x32xf32>,
      } else {
      }
      %c0_8 = arith.constant 0 : index
      %c0_9 = arith.constant 0 : index
      %13 = vector.load %arg6[%c0_8, %c0_9] : memref<3x64xf32, #tpu.memory_space<vmem>>, vector<3x64xf32>
      %14 = vector.shape_cast %0 : vector<1x8x32xf32> to vector<8x32xf32>
      %c0_10 = arith.constant 0 : index
      %c0_11 = arith.constant 0 : index
      %15 = vector.load %arg4[%c0_10, %c0_11] : memref<32x64xf32, #tpu.memory_space<vmem>>, vector<32x64xf32>
      %cst_12 = arith.constant dense<0.000000e+00> : vector<8x64xf32>
      %16 = tpu.matmul %14, %15, %cst_12 {dimension_numbers = #tpu.dot_dimension_numbers<[1], [0], [0], [1], [0, 0, 1, 1], [], []>} : vector<8x32xf32>, vector<32x64xf32>, vector<8x64xf32> -> vector<8x64xf32>
      %17 = vector.shape_cast %16 : vector<8x64xf32> to vector<1x8x64xf32>
      %c0_13 = arith.constant 0 : index
      %c0_14 = arith.constant 0 : index
      %18 = vector.load %arg13[%c0_13, %c0_14] : memref<1x64xf32, #tpu.memory_space<vmem>>, vector<1x64xf32>
      %19 = vector.shape_cast %18 : vector<1x64xf32> to vector<1x1x64xf32>
      %20 = vector.broadcast %19 : vector<1x1x64xf32> to vector<1x8x64xf32>
      %21 = arith.addf %17, %20 : vector<1x8x64xf32>
      %cst_15 = arith.constant 0.000000e+00 : f32
      %22 = vector.broadcast %cst_15 : f32 to vector<1x8x64xf32>
      %23 = arith.maximumf %21, %22 : vector<1x8x64xf32>
      %24 = vector.extract_strided_slice %13 {offsets = [1, 0], sizes = [1, 64], strides = [1, 1]} : vector<3x64xf32> to vector<1x64xf32>
      %25 = vector.shape_cast %24 : vector<1x64xf32> to vector<1x1x64xf32>
      %26 = vector.broadcast %25 : vector<1x1x64xf32> to vector<1x8x64xf32>
      %27 = arith.mulf %23, %26 : vector<1x8x64xf32>
      %28 = vector.extract_strided_slice %13 {offsets = [2, 0], sizes = [1, 64], strides = [1, 1]} : vector<3x64xf32> to vector<1x64xf32>
      %29 = vector.shape_cast %28 : vector<1x64xf32> to vector<1x1x64xf32>
      %30 = vector.broadcast %29 : vector<1x1x64xf32> to vector<1x8x64xf32>
      %31 = arith.addf %27, %30 : vector<1x8x64xf32>
      %32 = math.tanh %31 : vector<1x8x64xf32>
      %33 = vector.shape_cast %32 : vector<1x8x64xf32> to vector<8x64xf32>
      %c0_16 = arith.constant 0 : index
      %c0_17 = arith.constant 0 : index
      %34 = vector.load %arg7[%c0_16, %c0_17] : memref<64x32xf32, #tpu.memory_space<vmem>>, vector<64x32xf32>
      %cst_18 = arith.constant dense<0.000000e+00> : vector<8x32xf32>
      %35 = tpu.matmul %33, %34, %cst_18 {dimension_numbers = #tpu.dot_dimension_numbers<[1], [0], [0], [1], [0, 0, 1, 1], [], []>} : vector<8x64xf32>, vector<64x32xf32>, vector<8x32xf32> -> vector<8x32xf32>
      %36 = vector.shape_cast %35 : vector<8x32xf32> to vector<1x8x32xf32>
      %c0_19 = arith.constant 0 : index
      %c0_20 = arith.constant 0 : index
      %37 = vector.load %arg14[%c0_19, %c0_20] : memref<1x32xf32, #tpu.memory_space<vmem>>, vector<1x32xf32>
      %cst_21 = arith.constant dense<0xFF800000> : vector<1x32xf32>
      %38 = vector.multi_reduction <maximumf>, %36, %cst_21 [1] : vector<1x8x32xf32> to vector<1x32xf32>
      %39 = arith.maximumf %37, %38 : vector<1x32xf32>
      %40 = arith.subf %37, %39 : vector<1x32xf32>
      %41 = math.exp %40 : vector<1x32xf32>
      %42 = vector.shape_cast %39 : vector<1x32xf32> to vector<1x1x32xf32>
      %43 = vector.broadcast %42 : vector<1x1x32xf32> to vector<1x8x32xf32>
      %44 = arith.subf %36, %43 : vector<1x8x32xf32>
      %45 = math.exp %44 : vector<1x8x32xf32>
      %46 = vector.shape_cast %9 : vector<1x32xf32> to vector<1x1x32xf32>
      %47 = vector.broadcast %46 : vector<1x1x32xf32> to vector<1x8x32xf32>
      %48 = arith.subf %0, %47 : vector<1x8x32xf32>
      %49 = arith.mulf %45, %48 : vector<1x8x32xf32>
      %c0_22 = arith.constant 0 : index
      %c0_23 = arith.constant 0 : index
      %50 = vector.load %arg14[%c0_22, %c0_23] : memref<1x32xf32, #tpu.memory_space<vmem>>, vector<1x32xf32>
      tpu.vector_store %arg14[%c0_22, %c0_23], %39 {strides = array<i32>} : memref<1x32xf32, #tpu.memory_space<vmem>>, vector<1x32xf32>,
      %c0_24 = arith.constant 0 : index
      %c0_25 = arith.constant 0 : index
      %51 = vector.load %arg15[%c0_24, %c0_25] : memref<1x32xf32, #tpu.memory_space<vmem>>, vector<1x32xf32>
      %52 = arith.mulf %41, %51 : vector<1x32xf32>
      %cst_26 = arith.constant dense<0.000000e+00> : vector<1x32xf32>
      %53 = vector.multi_reduction <add>, %45, %cst_26 [1] : vector<1x8x32xf32> to vector<1x32xf32>
      %54 = arith.addf %52, %53 : vector<1x32xf32>
      %c0_27 = arith.constant 0 : index
      %c0_28 = arith.constant 0 : index
      %55 = vector.load %arg15[%c0_27, %c0_28] : memref<1x32xf32, #tpu.memory_space<vmem>>, vector<1x32xf32>
      tpu.vector_store %arg15[%c0_27, %c0_28], %54 {strides = array<i32>} : memref<1x32xf32, #tpu.memory_space<vmem>>, vector<1x32xf32>,
      %c0_29 = arith.constant 0 : index
      %c0_30 = arith.constant 0 : index
      %56 = vector.load %arg16[%c0_29, %c0_30] : memref<1x32xf32, #tpu.memory_space<vmem>>, vector<1x32xf32>
      %57 = arith.mulf %41, %56 : vector<1x32xf32>
      %cst_31 = arith.constant dense<0.000000e+00> : vector<1x32xf32>
      %58 = vector.multi_reduction <add>, %49, %cst_31 [1] : vector<1x8x32xf32> to vector<1x32xf32>
      %59 = arith.addf %57, %58 : vector<1x32xf32>
      %c0_32 = arith.constant 0 : index
      %c0_33 = arith.constant 0 : index
      %60 = vector.load %arg16[%c0_32, %c0_33] : memref<1x32xf32, #tpu.memory_space<vmem>>, vector<1x32xf32>
      tpu.vector_store %arg16[%c0_32, %c0_33], %59 {strides = array<i32>} : memref<1x32xf32, #tpu.memory_space<vmem>>, vector<1x32xf32>,
      %c0_34 = arith.constant 0 : index
      %c0_35 = arith.constant 0 : index
      %61 = vector.load %arg17[%c0_34, %c0_35] : memref<1x32xf32, #tpu.memory_space<vmem>>, vector<1x32xf32>
      %62 = arith.mulf %41, %61 : vector<1x32xf32>
      %63 = arith.mulf %49, %48 : vector<1x8x32xf32>
      %cst_36 = arith.constant dense<0.000000e+00> : vector<1x32xf32>
      %64 = vector.multi_reduction <add>, %63, %cst_36 [1] : vector<1x8x32xf32> to vector<1x32xf32>
      %65 = arith.addf %62, %64 : vector<1x32xf32>
      %c0_37 = arith.constant 0 : index
      %c0_38 = arith.constant 0 : index
      %66 = vector.load %arg17[%c0_37, %c0_38] : memref<1x32xf32, #tpu.memory_space<vmem>>, vector<1x32xf32>
      tpu.vector_store %arg17[%c0_37, %c0_38], %65 {strides = array<i32>} : memref<1x32xf32, #tpu.memory_space<vmem>>, vector<1x32xf32>,
      %c1_i32_39 = arith.constant 1 : i32
      %67 = arith.cmpi eq, %arg2, %c1_i32_39 : i32
      %68 = arith.extui %67 : i1 to i32
      %c0_i32_40 = arith.constant 0 : i32
      %69 = arith.cmpi ne, %68, %c0_i32_40 : i32
      scf.if %69 {
        %c0_41 = arith.constant 0 : index
        %c0_42 = arith.constant 0 : index
        %70 = vector.load %arg15[%c0_41, %c0_42] : memref<1x32xf32, #tpu.memory_space<vmem>>, vector<1x32xf32>
        %71 = tpu.reciprocal %70 : vector<1x32xf32> -> vector<1x32xf32>
        %c0_43 = arith.constant 0 : index
        %c0_44 = arith.constant 0 : index
        %72 = vector.load %arg16[%c0_43, %c0_44] : memref<1x32xf32, #tpu.memory_space<vmem>>, vector<1x32xf32>
        %73 = arith.mulf %72, %71 : vector<1x32xf32>
        %74 = arith.addf %9, %73 : vector<1x32xf32>
        %c0_45 = arith.constant 0 : index
        %c0_46 = arith.constant 0 : index
        %75 = vector.load %arg17[%c0_45, %c0_46] : memref<1x32xf32, #tpu.memory_space<vmem>>, vector<1x32xf32>
        %76 = arith.mulf %75, %71 : vector<1x32xf32>
        %77 = arith.mulf %73, %73 : vector<1x32xf32>
        %78 = arith.subf %76, %77 : vector<1x32xf32>
        %cst_47 = arith.constant 9.99999996E-13 : f32
        %79 = vector.broadcast %cst_47 : f32 to vector<1x32xf32>
        %80 = arith.maximumf %78, %79 : vector<1x32xf32>
        %81 = math.sqrt %80 : vector<1x32xf32>
        %82 = tpu.concatenate %74, %81 in 1 : vector<1x32xf32>, vector<1x32xf32> -> vector<1x64xf32>
        %c0_48 = arith.constant 0 : index
        %c0_49 = arith.constant 0 : index
        %83 = vector.load %arg8[%c0_48, %c0_49] : memref<64x48xf32, #tpu.memory_space<vmem>>, vector<64x48xf32>
        %cst_50 = arith.constant dense<0.000000e+00> : vector<1x48xf32>
        %84 = tpu.matmul %82, %83, %cst_50 {dimension_numbers = #tpu.dot_dimension_numbers<[1], [0], [0], [1], [0, 0, 1, 1], [], []>} : vector<1x64xf32>, vector<64x48xf32>, vector<1x48xf32> -> vector<1x48xf32>
        %c0_51 = arith.constant 0 : index
        %c0_52 = arith.constant 0 : index
        %85 = vector.load %arg9[%c0_51, %c0_52] : memref<1x48xf32, #tpu.memory_space<vmem>>, vector<1x48xf32>
        %86 = arith.addf %84, %85 : vector<1x48xf32>
        %87 = vector.shape_cast %86 : vector<1x48xf32> to vector<1x1x48xf32>
        %c0_53 = arith.constant 0 : index
        %c0_54 = arith.constant 0 : index
        %c0_55 = arith.constant 0 : index
        %88 = vector.load %arg10[%c0_53, %c0_54, %c0_55] : memref<1x1x48xf32, #tpu.memory_space<vmem>>, vector<1x1x48xf32>
        tpu.vector_store %arg10[%c0_53, %c0_54, %c0_55], %87 {strides = array<i32>} : memref<1x1x48xf32, #tpu.memory_space<vmem>>, vector<1x1x48xf32>,
      } else {
      }
    } else {
    }
    return
  }
  func.func @transform_0(%arg0: i32, %arg1: i32, %arg2: i32) -> (i32, i32, i32) {
    %c0_i32 = arith.constant 0 : i32
    %c0_i32_0 = arith.constant 0 : i32
    return %arg0, %arg2, %c0_i32 : i32, i32, i32
  }
  func.func @transform_1(%arg0: i32, %arg1: i32, %arg2: i32) -> (i32, i32) {
    %c0_i32 = arith.constant 0 : i32
    %c0_i32_0 = arith.constant 0 : i32
    %c0_i32_1 = arith.constant 0 : i32
    return %c0_i32, %c0_i32_0 : i32, i32
  }
  func.func @transform_2(%arg0: i32, %arg1: i32, %arg2: i32) -> (i32, i32) {
    %c0_i32 = arith.constant 0 : i32
    %c0_i32_0 = arith.constant 0 : i32
    %c0_i32_1 = arith.constant 0 : i32
    return %c0_i32, %c0_i32_0 : i32, i32
  }
  func.func @transform_3(%arg0: i32, %arg1: i32, %arg2: i32) -> (i32, i32) {
    %c0_i32 = arith.constant 0 : i32
    %c0_i32_0 = arith.constant 0 : i32
    %c0_i32_1 = arith.constant 0 : i32
    return %c0_i32, %c0_i32_0 : i32, i32
  }
  func.func @transform_4(%arg0: i32, %arg1: i32, %arg2: i32) -> (i32, i32) {
    %c0_i32 = arith.constant 0 : i32
    %c0_i32_0 = arith.constant 0 : i32
    %c0_i32_1 = arith.constant 0 : i32
    return %c0_i32, %c0_i32_0 : i32, i32
  }
  func.func @transform_5(%arg0: i32, %arg1: i32, %arg2: i32) -> (i32, i32) {
    %c0_i32 = arith.constant 0 : i32
    %c0_i32_0 = arith.constant 0 : i32
    %c0_i32_1 = arith.constant 0 : i32
    return %c0_i32, %c0_i32_0 : i32, i32
  }
  func.func @transform_6(%arg0: i32, %arg1: i32, %arg2: i32) -> (i32, i32) {
    %c0_i32 = arith.constant 0 : i32
    %c0_i32_0 = arith.constant 0 : i32
    %c0_i32_1 = arith.constant 0 : i32
    return %c0_i32, %c0_i32_0 : i32, i32
  }
  func.func @transform_7(%arg0: i32, %arg1: i32, %arg2: i32) -> (i32, i32, i32) {
    %c0_i32 = arith.constant 0 : i32
    %c0_i32_0 = arith.constant 0 : i32
    %c0_i32_1 = arith.constant 0 : i32
    return %arg0, %c0_i32, %c0_i32_0 : i32, i32, i32
  }
}

</mosaic_0001>

<bundles_post_ra>
// kernel: tpu_custom_call.1
= control target key start
LH: loop header
LB: loop body
LE: loop exit
PB: predicated region body
PF: predicated region fallthrough
CT: control target
= control target key end

     0   :  { %12 = vsyncpa [#allocation10], 0  ;;  %s1639_s0 = inlined_call_operand.vmem [shape: f32[2,16,32], index: 0, kind: input, shape index: {}]   ;;  %s1640_s1 = inlined_call_operand.vmem [shape: f32[32,64], index: 1, kind: input, shape index: {}]   ;;  %s1641_s2 = inlined_call_operand.vmem [shape: f32[64,64], index: 2, kind: input, shape index: {}]   ;;  %s1642_s3 = inlined_call_operand.vmem [shape: f32[3,64], index: 3, kind: input, shape index: {}]   ;;  %s1643_s4 = inlined_call_operand.vmem [shape: f32[64,32], index: 4, kind: input, shape index: {}]   ;;  %s1644_s5 = inlined_call_operand.vmem [shape: f32[64,48], index: 5, kind: input, shape index: {}]   ;;  %s1645_s6 = inlined_call_operand.vmem [shape: f32[1,48], index: 6, kind: input, shape index: {}]   ;;  %s1646_s7 = inlined_call_operand.hbm [shape: f32[2,1,48], index: 7, kind: output, shape index: {}]  }
   0x1   :  { %14 = vsyncpa [#allocation10 + $0x1], 0  ;;  %s1354_s24 = smov 0   ;;  %s1356_s25 = smov 0  }
   0x2   :  { %s1358_s26 = smov 0   ;;  %s1360_s27 = smov 0  }
   0x3   :  { %s1362_s28 = smov 0   ;;  %s1364_s29 = smov 0  }
   0x4   :  { %s1366_s30 = smov 0   ;;  %s1368_s8 = smov 0  }
   0x5   :  { %s1370_s9 = smov 0   ;;  %s1372_s10 = smov 0  }
   0x6 LB: > { %s914_s11 = sadd.s32 4294967295, %s1298_s10   ;;  %s915_s12 = sadd.s32 4294967294, %s1298_s10   ;;  %s1298_s10 = sphi %s1372_s10, %s20_s10   ;;  %s1294_s9 = sphi %s1370_s9, %s1666_s9   ;;  %s1290_s8 = sphi %s1368_s8, %s1665_s8   ;;  %s1286_s30 = sphi %s1366_s30, %s1664_s30   ;;  %s1282_s29 = sphi %s1364_s29, %s1663_s29   ;;  %s1278_s28 = sphi %s1362_s28, %s1662_s28   ;;  %s1274_s27 = sphi %s1360_s27, %s1661_s27   ;;  %s1270_s26 = sphi %s1358_s26, %s1660_s26   ;;  %s1266_s25 = sphi %s1356_s25, %s1659_s25   ;;  %s1262_s24 = sphi %s1354_s24, %s1658_s24  }
   0x7   : > { %s32_s13 = sadd.s32 1, %s1286_s30  ;;  %s35_s14 = sadd.s32 1, %s1290_s8 }
   0x8   : > { %p33_p0 = scmp.ge.s32.totalorder %s32_s13, 2  ;;  %s39_s15 = sadd.s32 1, %s1294_s9 }
   0x9   : > { %p210_p1 = scmp.ne.s32.totalorder %s1270_s26, %s1266_s25  ;;  %p211_p2 = scmp.eq.s32.totalorder %s914_s11, 7 }
   0xa   : > { %s1668_s13 = smov (%p33_p0, %s32_s13), 0  ;;  %s1670_s14 = smov (!%p33_p0, %s35_s14), %s1290_s8 }
   0xb   : > { %1649 = sst [smem:[#allocation12_spill]] %s1668_s13  ;;  %p216_p3 = scmp.ne.s32.totalorder %s1266_s25, %s1262_s24 }
   0xc   : > { %p37_p4 = scmp.ge.s32.totalorder %s1670_s14, 2  ;;  %p217_p5 = scmp.eq.s32.totalorder %s915_s12, 7 }
   0xd   : > { %p1416_p6 = por %p211_p2, %p210_p1  ;;  %p918_p7 = scmp.ge.s32.totalorder %s1298_s10, 1 }
   0xe   : > { %s1672_s14 = smov (%p37_p4, %s1670_s14), 0  ;;  %s1674_s15 = smov (!%p37_p4, %s39_s15), %s1294_s9 }
   0xf   : > { %1651 = sst [smem:[#allocation13_spill]] %s1672_s14  ;;  %p1424_p8 = por %p217_p5, %p216_p3 }
  0x10   : > { %p264_p9 = scmp.lt.s32.totalorder %s1298_s10, 9  ;;  %p41_p10 = scmp.ge.s32.totalorder %s1674_s15, 2 }
  0x11   : > { %s200_s19 = sadd.s32 1, %s1270_s26 }
  0x12   : > { %p265_p11 = pnand %p918_p7, %p264_p9  ;;  %s1676_s15 = smov (%p41_p10, %s1674_s15), 0 }
  0x13   : > { %1653 = sst [smem:[#allocation14_spill]] %s1676_s15  ;;  %s197_s18 = ssub.s32 %s1294_s9, %s1676_s15 }
  0x14   : > { %p198_p12 = scmp.eq.s32.totalorder %s197_s18, 0  ;;  %268 = sbr.rel (%p265_p11) target bundleno = 1325 (0x52d), region = 48 }
  0x15   : > { %s1648_s21 = sand.u32 (!%p265_p11), 1, %s1266_s25   ;;  %p298_p13 = scmp.lt.s32.totalorder (!%p265_p11), %s1282_s29, 1 }
  0x16   : > { %s1435_s20 = scalar_select %p198_p12, %s1270_s26, %s200_s19  }
  0x17   : > { %p300_p0 = scmp.lt.s32.totalorder (!%p265_p11), %s1274_s27, 1  ;;  %s1449_s19 = scalar_lea.vmem (!%p265_p11), [#allocation9], %s1648_s21 }
  0x18   : > { %p921_p1 = scmp.ne.s32.totalorder (!%p265_p11), %s1278_s28, 0 }
  0x1b   : > { %s299_s22 = scalar_select %p298_p13, %s1282_s29, 1 }
  0x1c   : > { %s301_s23 = scalar_select %p300_p0, %s1274_s27, 1 }
  0x1d   : > { %s919_s11 = sshll.u32 %s299_s22, 1  ;;  %310 = sbr.rel (%p921_p1) target bundleno = 61 (0x3d), region = 52 }
  0x1e   : > { %s303_s12 = sadd.s32 %s919_s11, %s301_s23  ;;  %p922_p2 = scmp.ne.s32.totalorder (!%p921_p1), %s1274_s27, 0 }
  0x1f   : > { %s920_s14 = sshll.u32 %s303_s12, 3 }
  0x20   : > { %s305_s18 = scalar_lea.vmem %s1639_s0, %s920_s14 }
  0x21   : > { %v1445_v0 = vld [vmem:[%s305_s18] sm:$0xff] }
  0x24   : > { %314 = sbr.rel (%p922_p2) target bundleno = 43 (0x2b), region = 56  ;;  %vm315_vm0 = vcmask (!%p922_p2), 253952   ;;  %v1300_v1 = vmov (!%p922_p2), 0.0  }
  0x25   : > { %316 = vst.msk [vmem:[#allocation2] sm:$0x1] (!%p922_p2), %vm315_vm0, %v1300_v1  ;;  %317 = vst.msk [vmem:[#allocation3] sm:$0x1] (!%p922_p2), %vm315_vm0, %v1300_v1 }
  0x2b PF: > { %vm319_vm1 = vcmask 261120   ;;  %v331_v2 = vmul.f32 %v1445_v0, %v1445_v0  ;;  %vm328_vm2 = vcmask 253952  }
  0x2c   : > { %v320_v3 = vsel %vm319_vm1, %v1445_v0, 0.0  ;;  %v318_v14 = vld [vmem:[#allocation2] sm:$0x1]  ;;  %v330_v17 = vld [vmem:[#allocation3] sm:$0x1] }
  0x2d   : > { %v321_v4 = vrot.slane %v320_v3, 4  ;;  %v332_v5 = vsel %vm319_vm1, %v331_v2, 0.0 }
  0x2e   : > { %v333_v6 = vrot.slane %v332_v5, 4 }
  0x2f   : > { %v322_v7 = vadd.f32 %v321_v4, %v320_v3 }
  0x30   : > { %v334_v8 = vadd.f32 %v333_v6, %v332_v5 }
  0x31   : > { %v323_v9 = vrot.slane %v322_v7, 2 }
  0x32   : > { %v335_v10 = vrot.slane %v334_v8, 2 }
  0x33   : > { %v324_v11 = vadd.f32 %v323_v9, %v322_v7 }
  0x34   : > { %v336_v12 = vadd.f32 %v335_v10, %v334_v8 }
  0x35   : > { %v325_v13 = vrot.slane %v324_v11, 1 }
  0x36   : > { %v337_v15 = vrot.slane %v336_v12, 1 }
  0x37   : > { %v326_v16 = vadd.f32 %v325_v13, %v324_v11 }
  0x38   : > { %v338_v18 = vadd.f32 %v337_v15, %v336_v12 }
  0x39   : > { %v327_v19 = vadd.f32 %v326_v16, %v318_v14 }
  0x3a   : > { %v339_v20 = vadd.f32 %v338_v18, %v330_v17 }
  0x3b   : > { %329 = vst.msk [vmem:[#allocation2] sm:$0x1] %vm328_vm2, %v327_v19 }
  0x3c   : > { %340 = vst.msk [vmem:[#allocation3] sm:$0x1] %vm328_vm2, %v339_v20 }
  0x3d PF: > { %p923_p3 = scmp.ne.s32.totalorder %s1278_s28, 1 }
  0x3e   : > { %p924_p4 = scmp.ne.s32.totalorder (!%p923_p3), %s1274_s27, 0 }
  0x3f   : > { %344 = sbr.rel (%p923_p3) target bundleno = 1300 (0x514), region = 60 }
  0x42   : > { %v345_v21 = vld [vmem:[#allocation2] sm:$0x1] (!%p923_p3) }
  0x43   : > { %v1457_v22 = vmul.f32 (!%p923_p3), 0.0625, %v345_v21 }
  0x46   : > { %350 = sbr.rel (%p924_p4) target bundleno = 425 (0x1a9), region = 64  ;;  %v351_v23 = vld [vmem:[#allocation3] sm:$0x1] (!%p924_p4)  ;;  %v353_v24 = vmul.f32 (!%p924_p4), %v1457_v22, %v1457_v22  ;;  %v374_v26 = vld [vmem:[%s1641_s2 + $0x8] sm:$0xff] (!%p924_p4)  ;;  %v1301_v28 = vmov (!%p924_p4), 0.0|0.0   ;;  %v375_v30 = vld [vmem:[%s1641_s2 + $0x10] sm:$0xff] (!%p924_p4)  ;;  %v364_v40 = vlaneseq (!%p924_p4) }
  0x47   : > { %v373_v25 = vld [vmem:[%s1641_s2] sm:$0xff] (!%p924_p4)  ;;  %v352_v27 = vmul.f32 (!%p924_p4), 0.0625, %v351_v23  ;;  %1034 = vmatprep.subr.bf16.mxu0 (!%p924_p4), %v1301_v28  ;;  %v376_v31 = vld [vmem:[%s1641_s2 + $0x18] sm:$0xff] (!%p924_p4)  ;;  %v378_v35 = vld [vmem:[%s1641_s2 + $0x28] sm:$0xff] (!%p924_p4)  ;;  %vm1302_vm3 = vmmov (!%p924_p4), 0   ;;  %v1303_v42 = vmov (!%p924_p4), 0.0  }
  0x48   : > { %v1035_v29 = vpack.c.bf16 (!%p924_p4), %v374_v26, %v373_v25  ;;  %v1038_v33 = vpack.c.bf16 (!%p924_p4), %v376_v31, %v375_v30  ;;  %v377_v34 = vld [vmem:[%s1641_s2 + $0x20] sm:$0xff] (!%p924_p4)  ;;  %v379_v38 = vld [vmem:[%s1641_s2 + $0x30] sm:$0xff] (!%p924_p4)  ;;  %v380_v39 = vld [vmem:[%s1641_s2 + $0x38] sm:$0xff] (!%p924_p4)  ;;  %982 = vmatprep.mubr.msk.f32.mxu0 (!%p924_p4), %vm1302_vm3, %v1303_v42  ;;  %vm458_vm4 = vcmask (!%p924_p4), 253952   ;;  %v1304_v43 = vmov (!%p924_p4), -1e+30  }
  0x49   : > { %v354_v32 = vsub.f32 (!%p924_p4), %v352_v27, %v353_v24  ;;  %v1041_v37 = vpack.c.bf16 (!%p924_p4), %v378_v35, %v377_v34  ;;  %v1044_v41 = vpack.c.bf16 (!%p924_p4), %v380_v39, %v379_v38  ;;  %459 = vst.msk [vmem:[#allocation5] sm:$0x1] (!%p924_p4), %vm458_vm4, %v1304_v43  ;;  %460 = vst.msk [vmem:[#allocation6] sm:$0x1] (!%p924_p4), %vm458_vm4, %v1303_v42  ;;  %v365_v44 = vshrl.u32 (!%p924_p4), %v364_v40, 7  ;;  %s1305_s12 = smov (!%p924_p4), 32  }
  0x4a   : > { %1036 = vmatpush3.bf16.msra.mxu0 (!%p924_p4), %v1035_v29  ;;  %461 = vst.msk [vmem:[#allocation7] sm:$0x1] (!%p924_p4), %vm458_vm4, %v1303_v42  ;;  %462 = vst.msk [vmem:[#allocation8] sm:$0x1] (!%p924_p4), %vm458_vm4, %v1303_v42  ;;  %vm371_vm7 = vcmask (!%p924_p4), 261120   ;;  %vm382_vm8 = vcmask (!%p924_p4), 523264  }
  0x4b   : > { %1037 = vmatprep.subr.bf16.mxu0 (!%p924_p4), %v1301_v28  ;;  %v355_v36 = vmax.f32 (!%p924_p4), %v354_v32, 1e-12  ;;  %v366_v48 = vsub.s32 (!%p924_p4), 0, %v365_v44  ;;  %v381_v54 = vld [vmem:[%s1642_s3] sm:$0x7] (!%p924_p4)  ;;  %vm456_vm9 = vcmask (!%p924_p4), 516096  }
  0x4d   : > { %1176 = vrsqrt.f32 %v355_v36  ;;  %vm358_vm5 = vcmp.eq.f32.partialorder %v355_v36, inf  ;;  %v361_v46 = vand.u32 2147483648, %v355_v36  ;;  %vm360_vm6 = vcmp.eq.f32.partialorder %v355_v36, 0.0 }
  0x4e   : > { %1039 = vmatpush3.bf16.msra.mxu0 %v1038_v33 }
  0x4f   : > { %1040 = vmatprep.subr.bf16.mxu0 %v1301_v28 }
  0x52   : > { %1042 = vmatpush3.bf16.msra.mxu0 %v1041_v37 }
  0x53   : > { %1043 = vmatprep.subr.bf16.mxu0 %v1301_v28 }
  0x56   : > { %1045 = vmatpush3.bf16.msra.mxu0 %v1044_v41 }
  0x57   : > { %v1177_v45 = vpop.eup %1176 }
  0x58   : > { %v357_v47 = vmul.f32 %v1177_v45, %v355_v36 }
  0x5a   : > { %v359_v49 = vsel %vm358_vm5, %v355_v36, %v357_v47 }
  0x5b   : > { %v362_v50 = vsel %vm360_vm6, %v361_v46, %v359_v49 }
  0x5c   : > { %v367_v51 = vrot.slane %v362_v50, %v366_v48 }
  0x5e   : > { %368 = vrot.lane.b32.xlu0 %v367_v51, %s1305_s12 }
  0xd0   : > { %v369_v52 = vpop.permute.xlu0 %368 }
  0xd1   : > { %v372_v53 = vsel %vm371_vm7, %v1457_v22, %v369_v52 }
  0xd2   : > { %983 = vmatmul.mubr.msk.f32.vlgmr.msra.gmra.mrb[0].mxu0 %vm382_vm8, %v372_v53 }
 0x1a5   : > { %v452_v55 = vpop.f32.mrb[0].mxu0 }
 0x1a6   : > { %v453_v56 = vadd.f32 %v452_v55, %v381_v54  ;;  %v984_v57 = vpop.f32.mrb[1].mxu0 }
 0x1a8   : > { %457 = vst.msk [vmem:[#allocation4] sm:$0x1] %vm456_vm9, %v453_v56 }
 0x1a9 PF: > { %v464_v58 = vld [vmem:[%s1640_s1] sm:$0xff]  ;;  %v465_v59 = vld [vmem:[%s1640_s1 + $0x8] sm:$0xff]  ;;  %v466_v60 = vld [vmem:[%s1640_s1 + $0x10] sm:$0xff]  ;;  %v1306_v61 = vmov 0.0|0.0   ;;  %vm1307_vm10 = vmmov 0   ;;  %v1308_v1 = vmov 0.0   ;;  %v551_v15 = vlaneseq }
 0x1aa   : > { %1046 = vmatprep.subr.bf16.mxu0 %v1306_v61  ;;  %v1047_v62 = vpack.c.bf16 %v465_v59, %v464_v58  ;;  %v467_v63 = vld [vmem:[%s1640_s1 + $0x18] sm:$0xff]  ;;  %993 = vmatprep.mubr.msk.f32.mxu0 %vm1307_vm10, %v1308_v1  ;;  %vm468_vm11 = vcmask 261120   ;;  %v562_v3 = vld [vmem:[%s1643_s4] sm:$0xff]  ;;  %v563_v4 = vld [vmem:[%s1643_s4 + $0x8] sm:$0xff]  ;;  %vm570_vm12 = vcmask 523264   ;;  %vm673_vm13 = vcmask 253952  }
 0x1ab   : > { %1052 = vmatprep.subr.bf16.mxu1 %v1306_v61  ;;  %1012 = vmatprep.mubr.msk.f32.mxu1 %vm1307_vm10, %v1308_v1  ;;  %v1050_v2 = vpack.c.bf16 %v467_v63, %v466_v60  ;;  %v1053_v5 = vpack.c.bf16 %v563_v4, %v562_v3  ;;  %v564_v6 = vld [vmem:[%s1643_s4 + $0x10] sm:$0xff]  ;;  %v565_v7 = vld [vmem:[%s1643_s4 + $0x18] sm:$0xff]  ;;  %v566_v9 = vld [vmem:[%s1643_s4 + $0x20] sm:$0xff]  ;;  %v552_v16 = vshrl.u32 %v551_v15, 7  ;;  %p929_p5 = scmp.ne.s32.totalorder %s1274_s27, 1 }
 0x1ac   : > { %1048 = vmatpush3.bf16.msra.mxu0 %v1047_v62  ;;  %v1056_v8 = vpack.c.bf16 %v565_v7, %v564_v6  ;;  %v567_v10 = vld [vmem:[%s1643_s4 + $0x28] sm:$0xff]  ;;  %v568_v12 = vld [vmem:[%s1643_s4 + $0x30] sm:$0xff]  ;;  %v569_v13 = vld [vmem:[%s1643_s4 + $0x38] sm:$0xff]  ;;  %vm1310_vm14 = vmmov (!%p929_p5), 0   ;;  %s1312_s22 = smov (!%p929_p5), 32   ;;  %vm821_vm1 = vcmask (!%p929_p5), 385024  }
 0x1ad   : > { %1049 = vmatprep.subr.bf16.mxu0 %v1306_v61  ;;  %1054 = vmatpush3.bf16.msra.mxu1 %v1053_v5  ;;  %v1059_v11 = vpack.c.bf16 %v567_v10, %v566_v9  ;;  %v1062_v14 = vpack.c.bf16 %v569_v13, %v568_v12  ;;  %v553_v17 = vsub.s32 1, %v552_v16  ;;  %v463_v18 = vld [vmem:[%s1642_s3] sm:$0x7]  ;;  %v558_v20 = vsub.s32 2, %v552_v16  ;;  %v644_v39 = vld [vmem:[#allocation5] sm:$0x1] }
 0x1ae   : > { %1055 = vmatprep.subr.bf16.mxu1 %v1306_v61  ;;  %v1533_v41 = vsub.s32 0, %v552_v16  ;;  %v686_v6 = vld [vmem:[#allocation7] sm:$0x1] }
 0x1af   : > { %v927_v19 = vld [vmem:[#allocation4] ss:$0 sm:$0xff]  ;;  %v554_v24 = vrot.slane %v463_v18, %v553_v17  ;;  %v559_v27 = vrot.slane %v463_v18, %v558_v20 }
 0x1b0   : > { %1051 = vmatpush3.bf16.msra.mxu0 %v1050_v2  ;;  %v669_v47 = vrot.slane %v1457_v22, %v1533_v41  ;;  %v675_v2 = vld [vmem:[#allocation6] sm:$0x1] }
 0x1b1   : > { %1057 = vmatpush3.bf16.msra.mxu1 %v1056_v8 }
 0x1b2   : > { %1058 = vmatprep.subr.bf16.mxu1 %v1306_v61  ;;  %v671_v49 = vsub.f32 %v1445_v0, %v669_v47 }
 0x1b3   : > { %994 = vmatmul.mubr.msk.f32.vlgmr.msra.gmra.mrb[0].mxu0 %vm468_vm11, %v1445_v0 }
 0x1b5   : > { %1060 = vmatpush3.bf16.msra.mxu1 %v1059_v11  ;;  %v697_v11 = vld [vmem:[#allocation8] sm:$0x1] }
 0x1b6   : > { %1061 = vmatprep.subr.bf16.mxu1 %v1306_v61 }
 0x1b9   : > { %1063 = vmatpush3.bf16.msra.mxu1 %v1062_v14 }
 0x286   : > { %v538_v21 = vpop.f32.mrb[0].mxu0 }
 0x287   : > { %v549_v23 = vadd.f32 %v927_v19, %v538_v21  ;;  %v995_v25 = vpop.f32.mrb[1].mxu0  ;;  %v739_v21 = vld [vmem:[%s1644_s5] sm:$0xff] (!%p929_p5) }
 0x288   : > { %v1309_v25 = vmov (!%p929_p5), 0.0|0.0  }
 0x289   : > { %v550_v26 = vmax.f32 %v549_v23, 0.0  ;;  %v740_v23 = vld [vmem:[%s1644_s5 + $0x8] sm:$0xff] (!%p929_p5)  ;;  %1064 = vmatprep.subr.bf16.mxu0 (!%p929_p5), %v1309_v25 }
 0x28b   : > { %v555_v28 = vmul.f32 %v554_v24, %v550_v26  ;;  %v741_v24 = vld [vmem:[%s1644_s5 + $0x10] sm:$0xff] (!%p929_p5)  ;;  %v1065_v26 = vpack.c.bf16 (!%p929_p5), %v740_v23, %v739_v21 }
 0x28d   : > { %v560_v29 = vadd.f32 %v559_v27, %v555_v28  ;;  %v742_v27 = vld [vmem:[%s1644_s5 + $0x18] sm:$0xff] (!%p929_p5)  ;;  %1066 = vmatpush3.bf16.msra.mxu0 (!%p929_p5), %v1065_v26 }
 0x28e   : > { %v1068_v28 = vpack.c.bf16 (!%p929_p5), %v742_v27, %v741_v24  ;;  %1067 = vmatprep.subr.bf16.mxu0 (!%p929_p5), %v1309_v25 }
 0x28f   : > { %1178 = vtanh.f32 %v560_v29  ;;  %v743_v29 = vld [vmem:[%s1644_s5 + $0x20] sm:$0xff] (!%p929_p5) }
 0x291   : > { %1069 = vmatpush3.bf16.msra.mxu0 (!%p929_p5), %v1068_v28 }
 0x292   : > { %1070 = vmatprep.subr.bf16.mxu0 (!%p929_p5), %v1309_v25 }
 0x299   : > { %v1179_v30 = vpop.eup %1178 }
 0x29a   : > { %1013 = vmatmul.mubr.msk.f32.vlgmr.msra.gmra.mrb[0].mxu1 %vm570_vm12, %v1179_v30  ;;  %v744_v30 = vld [vmem:[%s1644_s5 + $0x28] sm:$0xff] (!%p929_p5) }
 0x36d   : > { %v640_v31 = vpop.f32.mrb[0].mxu1 }
 0x36e   : > { %v645_v32 = vsel %vm468_vm11, %v640_v31, -inf  ;;  %v1014_v33 = vpop.f32.mrb[1].mxu1 }
 0x36f   : > { %v646_v34 = vrot.slane %v645_v32, 4 }
 0x371   : > { %v647_v35 = vmax.f32 %v645_v32, %v646_v34  ;;  %v1071_v32 = vpack.c.bf16 (!%p929_p5), %v744_v30, %v743_v29  ;;  %v745_v34 = vld [vmem:[%s1644_s5 + $0x30] sm:$0xff] (!%p929_p5) }
 0x373   : > { %v648_v36 = vrot.slane %v647_v35, 2  ;;  %1072 = vmatpush3.bf16.msra.mxu0 (!%p929_p5), %v1071_v32 }
 0x374   : > { %1073 = vmatprep.subr.bf16.mxu0 (!%p929_p5), %v1309_v25 }
 0x375   : > { %v649_v37 = vmax.f32 %v647_v35, %v648_v36  ;;  %v746_v35 = vld [vmem:[%s1644_s5 + $0x38] sm:$0xff] (!%p929_p5) }
 0x377   : > { %v650_v38 = vrot.slane %v649_v37, 1 }
 0x379   : > { %v651_v40 = vmax.f32 %v649_v37, %v650_v38 }
 0x37b   : > { %v652_v42 = vmax.f32 %v644_v39, %v651_v40 }
 0x37d   : > { %v660_v43 = vrot.slane %v652_v42, %v1533_v41  ;;  %674 = vst.msk [vmem:[#allocation5] sm:$0x1] %vm673_vm13, %v652_v42  ;;  %v653_v46 = vsub.f32 %v644_v39, %v652_v42  ;;  %v1074_v39 = vpack.c.bf16 (!%p929_p5), %v746_v35, %v745_v34 }
 0x37f   : > { %v662_v44 = vsub.f32 %v640_v31, %v660_v43  ;;  %v654_v48 = vmul.f32 1.442695, %v653_v46  ;;  %1075 = vmatpush3.bf16.msra.mxu0 (!%p929_p5), %v1074_v39 }
 0x381   : > { %v663_v45 = vmul.f32 1.442695, %v662_v44  ;;  %v1311_v44 = vmov (!%p929_p5), 0.0  }
 0x382   : > { %1031 = vmatprep.mubr.msk.f32.mxu0 (!%p929_p5), %vm1310_vm14, %v1311_v44 }
 0x383   : > { %1180 = vpow2.f32 %v663_v45 }
 0x384   : > { %1182 = vpow2.f32 %v654_v48 }
 0x38d   : > { %v1181_v50 = vpop.eup %1180 }
 0x38e   : > { %v672_v51 = vmul.f32 %v1181_v50, %v671_v49  ;;  %v677_v52 = vsel %vm468_vm11, %v1181_v50, 0.0  ;;  %v1183_v0 = vpop.eup %1182 }
 0x38f   : > { %v678_v53 = vrot.slane %v677_v52, 4  ;;  %v676_v7 = vmul.f32 %v1183_v0, %v675_v2  ;;  %v687_v13 = vmul.f32 %v1183_v0, %v686_v6  ;;  %v698_v17 = vmul.f32 %v1183_v0, %v697_v11 }
 0x390   : > { %v688_v54 = vsel %vm468_vm11, %v672_v51, 0.0  ;;  %v699_v55 = vmul.f32 %v672_v51, %v671_v49 }
 0x391   : > { %v679_v56 = vadd.f32 %v678_v53, %v677_v52  ;;  %v689_v57 = vrot.slane %v688_v54, 4 }
 0x392   : > { %v700_v58 = vsel %vm468_vm11, %v699_v55, 0.0 }
 0x393   : > { %v680_v59 = vrot.slane %v679_v56, 2  ;;  %v690_v60 = vadd.f32 %v689_v57, %v688_v54  ;;  %v701_v61 = vrot.slane %v700_v58, 4  ;;  %v747_v54 = vld [vmem:[%s1645_s6] sm:$0x1] (!%p929_p5) }
 0x395   : > { %v681_v62 = vadd.f32 %v680_v59, %v679_v56  ;;  %v691_v63 = vrot.slane %v690_v60, 2  ;;  %v702_v1 = vadd.f32 %v701_v61, %v700_v58 }
 0x397   : > { %v682_v3 = vrot.slane %v681_v62, 1  ;;  %v692_v4 = vadd.f32 %v691_v63, %v690_v60  ;;  %v703_v5 = vrot.slane %v702_v1, 2 }
 0x399   : > { %v683_v8 = vadd.f32 %v682_v3, %v681_v62  ;;  %v693_v9 = vrot.slane %v692_v4, 1  ;;  %v704_v10 = vadd.f32 %v703_v5, %v702_v1 }
 0x39b   : > { %v684_v12 = vadd.f32 %v683_v8, %v676_v7  ;;  %v694_v14 = vadd.f32 %v693_v9, %v692_v4  ;;  %v705_v15 = vrot.slane %v704_v10, 1  ;;  %712 = sbr.rel (%p929_p5) target bundleno = 1300 (0x514), region = 68 }
 0x39d   : > { %685 = vst.msk [vmem:[#allocation6] sm:$0x1] %vm673_vm13, %v684_v12  ;;  %v695_v16 = vadd.f32 %v694_v14, %v687_v13  ;;  %v706_v18 = vadd.f32 %v705_v15, %v704_v10 }
 0x39f   : > { %696 = vst.msk [vmem:[#allocation7] sm:$0x1] %vm673_vm13, %v695_v16  ;;  %v707_v19 = vadd.f32 %v706_v18, %v698_v17 }
 0x3a1   : > { %708 = vst.msk [vmem:[#allocation8] sm:$0x1] %vm673_vm13, %v707_v19 }
 0x3a4   : > { %v713_v20 = vld [vmem:[#allocation6] sm:$0x1] }
 0x3a5   : > { %1184 = vrcp.f32 %v713_v20 }
 0x3a6   : > { %v715_v31 = vld [vmem:[#allocation7] sm:$0x1] }
 0x3a8   : > { %v718_v33 = vld [vmem:[#allocation8] sm:$0x1] }
 0x3af   : > { %v1185_v36 = vpop.eup %1184 }
 0x3b0   : > { %v716_v37 = vmul.f32 %v1185_v36, %v715_v31  ;;  %v719_v38 = vmul.f32 %v1185_v36, %v718_v33 }
 0x3b2   : > { %v720_v40 = vmul.f32 %v716_v37, %v716_v37  ;;  %v717_v51 = vadd.f32 %v716_v37, %v1457_v22 }
 0x3b4   : > { %v721_v42 = vsub.f32 %v719_v38, %v720_v40 }
 0x3b6   : > { %v722_v43 = vmax.f32 %v721_v42, 1e-12 }
 0x3b8   : > { %1186 = vrsqrt.f32 %v722_v43  ;;  %vm725_vm15 = vcmp.eq.f32.partialorder %v722_v43, inf  ;;  %v728_v46 = vand.u32 2147483648, %v722_v43  ;;  %vm727_vm0 = vcmp.eq.f32.partialorder %v722_v43, 0.0 }
 0x3c2   : > { %v1187_v45 = vpop.eup %1186 }
 0x3c3   : > { %v724_v47 = vmul.f32 %v1187_v45, %v722_v43 }
 0x3c5   : > { %v726_v48 = vsel %vm725_vm15, %v722_v43, %v724_v47 }
 0x3c6   : > { %v729_v49 = vsel %vm727_vm0, %v728_v46, %v726_v48 }
 0x3c7   : > { %v734_v50 = vrot.slane %v729_v49, %v1533_v41 }
 0x3c9   : > { %735 = vrot.lane.b32.xlu0 %v734_v50, %s1312_s22 }
 0x43b   : > { %v736_v52 = vpop.permute.xlu0 %735 }
 0x43c   : > { %v738_v53 = vsel %vm468_vm11, %v717_v51, %v736_v52 }
 0x43d   : > { %1032 = vmatmul.mubr.msk.f32.vlgmr.msra.gmra.mrb[0].mxu0 %vm570_vm12, %v738_v53 }
 0x510   : > { %v817_v55 = vpop.f32.mrb[0].mxu0 }
 0x511   : > { %v818_v56 = vadd.f32 %v817_v55, %v747_v54  ;;  %v1033_v57 = vpop.f32.mrb[1].mxu0 }
 0x513   : > { %822 = vst.msk [vmem:[%s1449_s19] sm:$0x1] %vm821_vm1, %v818_v56 }
 0x514 PF: > { %s931_s23 = sshll.u32 %s1282_s29, 4  ;;  %s836_s18 = sshll.u32 %s1449_s19, 4  ;;  %s837_s18 = int_to_ptr.vmem [resolvable:$true] %s836_s18 }
 0x515   : > { %s1583_s21 = scalar_lea.hbm %s1646_s7, %s931_s23  ;;  %s1654_s13 = sand.u32 1, %s1266_s25  }
 0x516   : > { %s824_s14 = scalar_lea.sflag [#allocation10], %s1654_s13  ;;  %s1188_s15 = scalar_lea.vmem %s837_s18, 16 }
 0x517   : > { %p1189_p7 = scmp.ne.s32.totalorder %s837_s18, %s1188_s15  ;;  %s1313_s22 = smov [#allocation9]  }
 0x518   : > { %s1192_s28 = sshll.u32 %s1313_s22, 4  ;;  %s1193_s28 = int_to_ptr.vmem [resolvable:$false] %s1192_s28 }
 0x519   : > { %p1190_p9 = pnand %p1189_p7, %p1416_p6  ;;  %s1194_s27 = scalar_lea.vmem %s1193_s28, 32 }
 0x51a   : > { %p1195_p11 = scmp.lt.s32.totalorder %s837_s18, %s1193_s28  ;;  %p1196_p12 = scmp.lt.s32.totalorder %s1194_s27, %s1188_s15 }
 0x51b   : > { %p1191_p10 = pneg %p1190_p9 }
 0x51c   : > { %p1197_p13 = por %p1196_p12, %p1195_p11 }
 0x51e   : > { %p1198_p0 = pnand %p1197_p13, %p1191_p10 }
 0x520   : > { %1201 = shalt.err (!%p1198_p0)
}
 0x521   : > { %s1202_s29 = scalar_lea.hbm %s1583_s21, 16  ;;  %s1206_s11 = scalar_lea.hbm %s1646_s7, 32 }
 0x522   : > { %p1203_p1 = scmp.ne.s32.totalorder %s1583_s21, %s1202_s29  ;;  %p1207_p4 = scmp.lt.u32.totalorder %s1583_s21, %s1646_s7 }
 0x523   : > { %p1208_p5 = scmp.lt.u32.totalorder %s1206_s11, %s1202_s29  ;;  %p1210_p9 = scmp.lt.u32.totalorder %s1202_s29, %s1583_s21 }
 0x524   : > { %p1204_p2 = pnand %p1203_p1, %p1416_p6 }
 0x525   : > { %p1209_p7 = por %p1208_p5, %p1207_p4 }
 0x526   : > { %p1205_p3 = pneg %p1204_p2 }
 0x527   : > { %p1211_p10 = por %p1210_p9, %p1209_p7 }
 0x529   : > { %p1212_p11 = pnand %p1211_p10, %p1205_p3 }
 0x52b   : > { %1215 = shalt.err (!%p1212_p11)
}
 0x52c   : > { %1076 = dma.vmem_to_hbm [thread:$0]  (%p1416_p6), %s837_s18, 16, %s1583_s21, %s824_s14  }
 0x52d PF: > { %p1082_p12 = scmp.ge.s32.totalorder %s1298_s10, 2  ;;  %s848_s15 = sand.u32 1, %s1262_s24  }
 0x52e   : > { %s849_s22 = scalar_lea.sflag [#allocation10], %s848_s15 }
 0x52f   : > { %p1079_p13 = pnand %p1082_p12, %p1424_p8 }
 0x531   : > { %1257 = dma.done.wait (!%p1079_p13), %s849_s22, 16  }
 0x532   : > { %1259 = vsyncadd (!%p1079_p13), %s849_s22, 4294967280  ;;  %s20_s10 = sadd.s32 1, %s1298_s10   ;;  %s1655_s16 = sld [smem:[#allocation12_spill]] }
 0x533   : > { %p17_p0 = scmp.ge.s32.totalorder %s20_s10, 10   ;;  %s1656_s21 = sld [smem:[#allocation13_spill]] }
 0x534   : > { %s1657_s18 = sld [smem:[#allocation14_spill]]  ;;  %s1658_s24 = smov %s1266_s25 }
 0x535   : > { %s1659_s25 = smov %s1270_s26  ;;  %s1660_s26 = smov %s1435_s20 }
 0x536   : > { %s1661_s27 = smov %s1286_s30  ;;  %s1662_s28 = smov %s1290_s8 }
 0x537   : > { %s1663_s29 = smov %s1294_s9  ;;  %19 = sbr.rel (!%p17_p0) target bundleno = 6 (0x6), region = 103 }
 0x538   : > { %s1664_s30 = smov %s1655_s16 }
 0x539   : > { %s1665_s8 = smov %s1656_s21 }
 0x53a   : > { %s1666_s9 = smov %s1657_s18 }
 0x53e   :  { %853 = vsyncpa [#allocation10], 1 }
 0x53f   :  { %855 = vsyncpa [#allocation10 + $0x1], 1 }

</bundles_post_ra>
